<compile_context>
chip_gen: v7x
topology: tpu7x:2x2x1
jax: 0.10.0
libtpu: 0.0.40
codegen_flags: <defaults>
</compile_context>

<pallas_src>
import jax
import jax.numpy as jnp
from jax.experimental import pallas as pl
from jax.experimental.pallas import tpu as pltpu

NUM_CLASSES = 6          # len(MaskColorMap)
SMOOTH = 1e-4            # module uses 0.0001 everywhere


def _vmem_capacity_bytes():
    try:
        info = pltpu.get_tpu_info()
        return int(getattr(info, "vmem_capacity_bytes", 64 * 1024 * 1024))
    except Exception:
        return 64 * 1024 * 1024   # conservative (v7x-sized) fallback


def _pick_tile_and_vmem(hw, tile_l_cap=None):
    """Lane-tile size + vmem limit, sized per TPU generation.

    Worst-case VMEM per grid step: 2 inputs x 2 pipeline buffers x 8 padded
    sublanes x 4 B = 128 B per lane -> keep the working set under ~half of VMEM.
    """
    vmem_cap = _vmem_capacity_bytes()
    budget = vmem_cap // 2
    lane_cap = max(128, ((budget // 128) // 128) * 128)
    if tile_l_cap is not None:                      # explicit override (tests/tuning)
        lane_cap = min(lane_cap, max(128, (tile_l_cap // 128) * 128))
    tile_l = hw if hw <= lane_cap else lane_cap     # full-extent block is always legal
    vmem_needed = 128 * tile_l + (4 << 20)
    vmem_limit = int(min(max(vmem_needed, 32 << 20), vmem_cap - (8 << 20)))
    return tile_l, vmem_limit


def _lane_sum(x):
    """Lane-axis reduction with two independent partial accumulators on big tiles."""
    lanes = x.shape[-1]
    if lanes >= 512 and lanes % 256 == 0:
        h = lanes // 2
        return (jnp.sum(x[:, :h], axis=1, keepdims=True)
                + jnp.sum(x[:, h:], axis=1, keepdims=True))
    return jnp.sum(x, axis=1, keepdims=True)


def _make_kernel(hw, tile_l, num_l):
    ragged = (hw % tile_l) != 0
    last_l = num_l - 1

    def accumulate(pred_ref, true_ref, part_ref, l_idx, mask_last):
        p = pred_ref[0].astype(jnp.float32)   # (C, tile_l), f32 compute
        t = true_ref[0].astype(jnp.float32)
        if mask_last:
            # Mask out-of-bounds lanes of the last partial tile only.
            valid = hw - l_idx * tile_l
            lane = jax.lax.broadcasted_iota(jnp.int32, p.shape, 1)
            keep = lane < valid
            p = jnp.where(keep, p, 0.0)
            t = jnp.where(keep, t, 0.0)
        inter = _lane_sum(t * p)               # (C, 1) per-class intersection
        denom = _lane_sum(t + p)               # (C, 1) per-class sum(t)+sum(p)
        part = jnp.concatenate([inter, denom], axis=1)   # (C, 2)
        part_ref[...] += part[None, :, :]

    def kernel(pred_ref, true_ref, part_ref):
        l_idx = pl.program_id(1)

        @pl.when(l_idx == 0)
        def _init():
            part_ref[...] = jnp.zeros_like(part_ref)

        if ragged:
            @pl.when(l_idx != last_l)
            def _interior():
                accumulate(pred_ref, true_ref, part_ref, l_idx, mask_last=False)

            @pl.when(l_idx == last_l)
            def _last():
                accumulate(pred_ref, true_ref, part_ref, l_idx, mask_last=True)
        else:
            accumulate(pred_ref, true_ref, part_ref, l_idx, mask_last=False)

    return kernel


def multi_dice_loss(y_pred, y_true, *, transfer_dtype=jnp.bfloat16, tile_l_cap=None):
    """Multi-class soft Dice loss matching MultiDiceLoss.forward.

    y_pred, y_true: (N, 6, H, W).  transfer_dtype controls the dtype streamed
    through HBM into the kernel (bf16 halves DMA volume; None keeps the input
    dtype for a bit-exact f32 path).  Accumulation is always f32.
    """
    n, c, h, w = y_pred.shape
    assert c == NUM_CLASSES, f"expected {NUM_CLASSES} channels, got {c}"
    hw = h * w

    if transfer_dtype is not None:
        y_pred = y_pred.astype(transfer_dtype)
        y_true = y_true.astype(transfer_dtype)

    # Free contiguous views — no transpose, no extra HBM traffic.
    pred3d = y_pred.reshape(n, c, hw)
    true3d = y_true.reshape(n, c, hw)

    tile_l, vmem_limit = _pick_tile_and_vmem(hw, tile_l_cap)
    num_l = pl.cdiv(hw, tile_l)

    partials = pl.pallas_call(
        _make_kernel(hw, tile_l, num_l),
        out_shape=jax.ShapeDtypeStruct((n, c, 2), jnp.float32),
        grid_spec=pltpu.PrefetchScalarGridSpec(
            num_scalar_prefetch=0,
            grid=(n, num_l),
            in_specs=[
                pl.BlockSpec((1, c, tile_l), lambda i, l: (i, 0, l)),
                pl.BlockSpec((1, c, tile_l), lambda i, l: (i, 0, l)),
            ],
            # Per-batch partials resident in VMEM across the l (reduction) axis.
            out_specs=pl.BlockSpec((1, c, 2), lambda i, l: (i, 0, 0)),
        ),
        compiler_params=pltpu.CompilerParams(
            dimension_semantics=("parallel", "arbitrary"),
            vmem_limit_bytes=vmem_limit,
        ),
    )(pred3d, true3d)

    # Tiny final combine in plain JAX (6 classes).
    inter = jnp.sum(partials[:, :, 0], axis=0)   # (C,)
    denom = jnp.sum(partials[:, :, 1], axis=0)   # (C,)
    dice = (2.0 * inter + SMOOTH) / (denom + SMOOTH)
    return 1.0 - jnp.sum(dice) / NUM_CLASSES


def _reference_loss(y_pred, y_true):
    # Pure-JAX mirror of the PyTorch module for a correctness check.
    dice = 0.0
    for idx in range(NUM_CLASSES):
        t = y_true[:, idx].reshape(-1).astype(jnp.float32)
        p = y_pred[:, idx].reshape(-1).astype(jnp.float32)
        inter = jnp.sum(t * p)
        dice += (2.0 * inter + SMOOTH) / (jnp.sum(t) + jnp.sum(p) + SMOOTH)
    return 1.0 - dice / NUM_CLASSES


def _make_inputs(key, n, h, w):
    k_pred, k_true = jax.random.split(key)
    logits = jax.random.normal(k_pred, (n, NUM_CLASSES, h, w), dtype=jnp.float32)
    y_pred = jax.nn.softmax(logits, axis=1)
    labels = jax.random.randint(k_true, (n, h, w), 0, NUM_CLASSES)
    y_true = jnp.transpose(
        jax.nn.one_hot(labels, NUM_CLASSES, dtype=jnp.float32), (0, 3, 1, 2)
    )  # (N, C, H, W)
    return y_pred, y_true


if __name__ == "__main__":
    key = jax.random.PRNGKey(0)
    k1, k2 = jax.random.split(key)

    # Case 1: canonical small shape, single spatial tile, bit-exact f32 transfer.
    y_pred, y_true = _make_inputs(k1, 2, 16, 16)
    loss_f32 = jax.block_until_ready(
        multi_dice_loss(y_pred, y_true, transfer_dtype=None))
    ref = jax.block_until_ready(_reference_loss(y_pred, y_true))
    assert jnp.allclose(loss_f32, ref, rtol=1e-5, atol=1e-5), (loss_f32, ref)

    # Case 2: default bf16-transfer path.  Tight check against a reference on the
    # bf16-rounded inputs; loose check against the full-f32 reference.
    loss_bf16 = jax.block_until_ready(multi_dice_loss(y_pred, y_true))
    ref_bf16 = jax.block_until_ready(_reference_loss(
        y_pred.astype(jnp.bfloat16).astype(jnp.float32),
        y_true.astype(jnp.bfloat16).astype(jnp.float32)))
    assert jnp.allclose(loss_bf16, ref_bf16, rtol=1e-5, atol=1e-5), (loss_bf16, ref_bf16)
    assert jnp.allclose(loss_bf16, ref, rtol=5e-3, atol=5e-3), (loss_bf16, ref)

    # Case 3: forced multi-tile grid with a ragged last tile (tile cap 128 lanes,
    # H*W = 225) to exercise the gated masked-tail path; f32 for a tight check.
    y_pred2, y_true2 = _make_inputs(k2, 2, 15, 15)
    loss2 = jax.block_until_ready(
        multi_dice_loss(y_pred2, y_true2, transfer_dtype=None, tile_l_cap=128))
    ref2 = jax.block_until_ready(_reference_loss(y_pred2, y_true2))
    assert jnp.allclose(loss2, ref2, rtol=1e-5, atol=1e-5), (loss2, ref2)

    print("KERNEL_OK")
</pallas_src>

<mosaic_0001>
module attributes {stable_mosaic.version = 11 : i64} {
  func.func @kernel(%arg0: i32, %arg1: i32, %arg2: memref<1x6x256xf32, #tpu.memory_space<vmem>>, %arg3: memref<1x6x256xf32, #tpu.memory_space<vmem>>, %arg4: memref<1x6x2xf32, #tpu.memory_space<vmem>>) attributes {dimension_semantics = [#tpu.dimension_semantics<parallel>, #tpu.dimension_semantics<arbitrary>], iteration_bounds = array<i64: 2, 1>, scalar_prefetch = 0 : i64, scratch_operands = 0 : i64, tpu.core_type = #tpu.core_type<tc>, window_params = [{transform_indices = @transform_0, window_bounds = array<i64: 1, 6, 256>}, {transform_indices = @transform_1, window_bounds = array<i64: 1, 6, 256>}, {transform_indices = @transform_2, window_bounds = array<i64: 1, 6, 2>}]} {
    %c0_i32 = arith.constant 0 : i32
    %0 = arith.cmpi eq, %arg1, %c0_i32 : i32
    %1 = arith.extui %0 : i1 to i32
    %c0_i32_0 = arith.constant 0 : i32
    %2 = arith.cmpi ne, %1, %c0_i32_0 : i32
    scf.if %2 {
      %cst_13 = arith.constant 0.000000e+00 : f32
      %18 = vector.broadcast %cst_13 : f32 to vector<1x6x2xf32>
      %c0_14 = arith.constant 0 : index
      %c0_15 = arith.constant 0 : index
      %c0_16 = arith.constant 0 : index
      %19 = vector.load %arg4[%c0_14, %c0_15, %c0_16] : memref<1x6x2xf32, #tpu.memory_space<vmem>>, vector<1x6x2xf32>
      tpu.vector_store %arg4[%c0_14, %c0_15, %c0_16], %18 {strides = array<i32>} : memref<1x6x2xf32, #tpu.memory_space<vmem>>, vector<1x6x2xf32>,
    } else {
    }
    %c0 = arith.constant 0 : index
    %c0_1 = arith.constant 0 : index
    %c0_2 = arith.constant 0 : index
    %3 = vector.load %arg2[%c0, %c0_1, %c0_2] : memref<1x6x256xf32, #tpu.memory_space<vmem>>, vector<1x6x256xf32>
    %4 = vector.shape_cast %3 : vector<1x6x256xf32> to vector<6x256xf32>
    %c0_3 = arith.constant 0 : index
    %c0_4 = arith.constant 0 : index
    %c0_5 = arith.constant 0 : index
    %5 = vector.load %arg3[%c0_3, %c0_4, %c0_5] : memref<1x6x256xf32, #tpu.memory_space<vmem>>, vector<1x6x256xf32>
    %6 = vector.shape_cast %5 : vector<1x6x256xf32> to vector<6x256xf32>
    %7 = arith.mulf %6, %4 : vector<6x256xf32>
    %cst = arith.constant dense<0.000000e+00> : vector<6xf32>
    %8 = vector.multi_reduction <add>, %7, %cst [1] : vector<6x256xf32> to vector<6xf32>
    %9 = vector.shape_cast %8 : vector<6xf32> to vector<6x1xf32>
    %10 = arith.addf %6, %4 : vector<6x256xf32>
    %cst_6 = arith.constant dense<0.000000e+00> : vector<6xf32>
    %11 = vector.multi_reduction <add>, %10, %cst_6 [1] : vector<6x256xf32> to vector<6xf32>
    %12 = vector.shape_cast %11 : vector<6xf32> to vector<6x1xf32>
    %13 = tpu.concatenate %9, %12 in 1 : vector<6x1xf32>, vector<6x1xf32> -> vector<6x2xf32>
    %c0_7 = arith.constant 0 : index
    %c0_8 = arith.constant 0 : index
    %c0_9 = arith.constant 0 : index
    %14 = vector.load %arg4[%c0_7, %c0_8, %c0_9] : memref<1x6x2xf32, #tpu.memory_space<vmem>>, vector<1x6x2xf32>
    %15 = vector.shape_cast %13 : vector<6x2xf32> to vector<1x6x2xf32>
    %16 = arith.addf %14, %15 : vector<1x6x2xf32>
    %c0_10 = arith.constant 0 : index
    %c0_11 = arith.constant 0 : index
    %c0_12 = arith.constant 0 : index
    %17 = vector.load %arg4[%c0_10, %c0_11, %c0_12] : memref<1x6x2xf32, #tpu.memory_space<vmem>>, vector<1x6x2xf32>
    tpu.vector_store %arg4[%c0_10, %c0_11, %c0_12], %16 {strides = array<i32>} : memref<1x6x2xf32, #tpu.memory_space<vmem>>, vector<1x6x2xf32>,
    return
  }
  func.func @transform_0(%arg0: i32, %arg1: i32) -> (i32, i32, i32) {
    %c0_i32 = arith.constant 0 : i32
    %c0_i32_0 = arith.constant 0 : i32
    return %arg0, %c0_i32, %arg1 : i32, i32, i32
  }
  func.func @transform_1(%arg0: i32, %arg1: i32) -> (i32, i32, i32) {
    %c0_i32 = arith.constant 0 : i32
    %c0_i32_0 = arith.constant 0 : i32
    return %arg0, %c0_i32, %arg1 : i32, i32, i32
  }
  func.func @transform_2(%arg0: i32, %arg1: i32) -> (i32, i32, i32) {
    %c0_i32 = arith.constant 0 : i32
    %c0_i32_0 = arith.constant 0 : i32
    %c0_i32_1 = arith.constant 0 : i32
    return %arg0, %c0_i32, %c0_i32_0 : i32, i32, i32
  }
}

</mosaic_0001>

<bundles_post_ra>
// kernel: tpu_custom_call.1
= control target key start
LH: loop header
LB: loop body
LE: loop exit
PB: predicated region body
PF: predicated region fallthrough
CT: control target
= control target key end

     0   :  { %s401_s9 = smov 0   ;;  %s403_s10 = smov 0   ;;  %s437_s0 = inlined_call_operand.vmem [shape: f32[2,6,256], index: 0, kind: input, shape index: {}]   ;;  %s438_s1 = inlined_call_operand.vmem [shape: f32[2,6,256], index: 1, kind: input, shape index: {}]   ;;  %s439_s2 = inlined_call_operand.vmem [shape: f32[2,6,2], index: 2, kind: output, shape index: {}]  }
   0x1   :  { %s405_s11 = smov 0  }
   0x2 LB: > { %s24_s12 = sadd.s32 1, %s379_s10  ;;  %p326_p0 = scmp.ge.s32.totalorder %s383_s11, 1  ;;  %s383_s11 = sphi %s405_s11, %s12_s11   ;;  %s379_s10 = sphi %s403_s10, %s441_s10   ;;  %s375_s9 = sphi %s401_s9, %s440_s9  }
   0x3   : > { %p26_p1 = scmp.ge.s32.totalorder %s24_s12, 2  ;;  %p148_p2 = scmp.lt.s32.totalorder %s383_s11, 3 }
   0x5   : > { %s443_s12 = smov (%p26_p1, %s24_s12), 0  ;;  %p149_p3 = pnand %p326_p0, %p148_p2 }
   0x6   : > { %p183_p4 = scmp.lt.s32.totalorder (!%p149_p3), %s375_s9, 1  ;;  %vm218_vm0 = vcmask (!%p149_p3), 1045504   ;;  %vm210_vm1 = vcmask (!%p149_p3), 13312   ;;  %v385_v14 = vmov (!%p149_p3), 0.0   ;;  %vm231_vm2 = vcmask (!%p149_p3), 7168  }
   0x7   : > { %152 = sbr.rel (%p149_p3) target bundleno = 174 (0xae), region = 28 }
   0xe   : > { %s445_s9 = smov (!%p183_p4, %s375_s9), 1 }
   0xf   : > { %s334_s13 = sshll.u32 %s445_s9, 4  ;;  %s331_s20 = sshll.u32 %s445_s9, 3 }
  0x10   : > { %s190_s16 = scalar_lea.vmem %s437_s0, %s334_s13  ;;  %s200_s19 = scalar_lea.vmem %s438_s1, %s334_s13 }
  0x11   : > { %v212_v0 = vld [vmem:[%s190_s16] sm:$0x3f]  ;;  %v213_v1 = vld [vmem:[%s190_s16 + $0x8] sm:$0x3f]  ;;  %s205_s23 = scalar_lea.vmem %s439_s2, %s331_s20 }
  0x12   : > { %v214_v2 = vld [vmem:[%s200_s19] sm:$0x3f]  ;;  %v215_v3 = vld [vmem:[%s200_s19 + $0x8] sm:$0x3f]  ;;  %211 = vst.msk [vmem:[%s205_s23] sm:$0x3f] %vm210_vm1, %v385_v14 }
  0x13   : > { %v216_v4 = vmul.f32 %v214_v2, %v212_v0  ;;  %v224_v5 = vadd.f32 %v214_v2, %v212_v0  ;;  %v217_v6 = vmul.f32 %v215_v3, %v213_v1  ;;  %v225_v7 = vadd.f32 %v215_v3, %v213_v1 }
  0x15   : > { %v219_v8 = vsel %vm218_vm0, %v216_v4, 0.0  ;;  %v220_v9 = vsel %vm218_vm0, %v217_v6, 0.0  ;;  %v226_v10 = vsel %vm218_vm0, %v224_v5, 0.0  ;;  %v227_v11 = vsel %vm218_vm0, %v225_v7, 0.0 }
  0x16   : > { %v221_v12 = vadd.f32 %v220_v9, %v219_v8  ;;  %v228_v13 = vadd.f32 %v227_v11, %v226_v10 }
  0x18   : > { %222 = vadd.xlane.f32.xlu0 %v221_v12 }
  0x19   : > { %v233_v16 = vld [vmem:[%s205_s23] sm:$0x3f] }
  0x1c   : > { %229 = vadd.xlane.f32.xlu0 %v228_v13 }
  0xa5   : > { %v223_v15 = vpop.xlane.xlu0 %222 }
  0xa9   : > { %v230_v17 = vpop.xlane.xlu0 %229 }
  0xaa   : > { %v232_v18 = vsel %vm231_vm2, %v223_v15, %v230_v17 }
  0xab   : > { %v234_v19 = vadd.f32 %v233_v16, %v232_v18 }
  0xad   : > { %236 = vst.msk [vmem:[%s205_s23] sm:$0x3f] %vm210_vm1, %v234_v19 }
  0xae PF: > { %s12_s11 = sadd.s32 1, %s383_s11   ;;  %s440_s9 = smov %s379_s10 }
  0xaf   : > { %p9_p5 = scmp.ge.s32.totalorder %s12_s11, 4   ;;  %s441_s10 = smov %s443_s12 }
  0xb1   :  { %11 = sbr.rel (!%p9_p5) target bundleno = 2 (0x2), region = 65 }

</bundles_post_ra>
